<compile_context>
chip_gen: v7x
topology: tpu7x:2x2x1
jax: 0.10.0
libtpu: 0.0.40
codegen_flags: <defaults>
</compile_context>

<pallas_src>
import numpy as np
import jax
import jax.numpy as jnp
from jax import lax
from jax.experimental import pallas as pl
from jax.experimental.pallas import tpu as pltpu


def _linear_interp_matrix(n_in: int, n_out: int) -> np.ndarray:
    """1-D linear interpolation matrix, align_corners=True (PyTorch Upsample)."""
    A = np.zeros((n_out, n_in), np.float32)
    if n_in == 1:
        A[:, 0] = 1.0
        return A
    pos = np.arange(n_out, dtype=np.float64) * (n_in - 1) / (n_out - 1)
    lo = np.minimum(np.floor(pos).astype(np.int64), n_in - 2)
    frac = pos - lo
    for i in range(n_out):
        A[i, lo[i]] += 1.0 - frac[i]
        A[i, lo[i] + 1] += frac[i]
    return A


def _pick_batch_tile(n: int, l2: int, *, lane: int = 128, max_lanes: int = 1024) -> int:
    """Largest divisor B of n with B*l2 a multiple of `lane`, >= 2 grid steps
    (keeps both v7x TensorCores busy) and a bounded packed lane width."""
    divisors = [d for d in range(1, n + 1) if n % d == 0]
    best = 1
    for d in divisors:
        if n > 1 and (n // d) < 2:
            continue
        if d * l2 > max_lanes:
            continue
        if (d * l2) % lane == 0:
            best = max(best, d)
    if best == 1:
        cands = [d for d in divisors if (n // d) >= 2 and d * l2 <= max_lanes]
        if cands:
            best = max(cands)
    return best


def up_forward(x1, x2, params, *, batch_tile=None, eps=1e-5, compute_dtype=None):
    """Pallas implementation of Up(bilinear=True).forward(x1, x2).

    x1: (N, C1, L1), x2: (N, C2, L2) with C2 >= 2*C1 and L2 >= 2*L1.
    params: dict of conv / BN / PReLU parameters in PyTorch layout.
    """
    N, C1, L1 = x1.shape
    N2, C2, L2 = x2.shape
    assert N == N2
    C1u, L1u = 2 * C1, 2 * L1
    assert C2 >= C1u and L2 >= L1u, "negative F.pad (crop) unsupported"

    w1, w2 = params["w1"], params["w2"]
    mid, Cin, K1 = w1.shape
    Cout, mid2, K2 = w2.shape
    assert K1 == 3 and K2 == 3 and mid2 == mid and Cin == 2 * C2

    f32 = jnp.float32
    # MXU operands stay in the caller's dtype (no forced f32 promotion).
    cdt = jnp.dtype(compute_dtype) if compute_dtype is not None else jnp.dtype(x1.dtype)

    if batch_tile is None:
        batch_tile = _pick_batch_tile(N, L2)
    B = batch_tile
    assert N % B == 0
    G = N // B
    BL1, BL2 = B * L1, B * L2

    top = (C2 - C1u) // 2            # static F.pad offsets (channel / length)
    left = (L2 - L1u) // 2

    # Separable align_corners=True bilinear upsample matrices.
    a_c = jnp.asarray(_linear_interp_matrix(C1, C1u), cdt)            # (2C1, C1)
    a_l = _linear_interp_matrix(L1, L1u)                              # (2L1, L1)
    # Fuse length-upsample + lane F.pad + batch lane-packing into a single
    # block-diagonal matrix: each (L1, L2) block holds A_l^T at column `left`.
    blk = np.zeros((L1, L2), np.float32)
    blk[:, left:left + L1u] = a_l.T
    al_emb = jnp.asarray(np.kron(np.eye(B, dtype=np.float32), blk), cdt)  # (B*L1, B*L2)

    # Conv weights -> (K, Cout, Cin): each tap is one clean MXU matmul.
    # The first conv's contraction is split (x2 channels / upsampled channels);
    # the channel-pad rows of the concat are identically zero, so drop them.
    w1_t = jnp.transpose(w1, (2, 0, 1))                                # (3, mid, 2*C2)
    w1a = w1_t[:, :, :C2].astype(cdt)                                  # (3, mid, C2)
    w1b = w1_t[:, :, C2 + top:C2 + top + C1u].astype(cdt)              # (3, mid, 2C1)
    w2t = jnp.transpose(w2, (2, 0, 1)).astype(cdt)                     # (3, Cout, mid)

    # Fold conv bias + inference BatchNorm into per-channel scale / shift (f32).
    def fold(b, g, beta, mean, var):
        s = g.astype(f32) / jnp.sqrt(var.astype(f32) + eps)
        t = (b.astype(f32) - mean.astype(f32)) * s + beta.astype(f32)
        return s[:, None], t[:, None]

    s1, t1 = fold(params["b1"], params["g1"], params["beta1"],
                  params["mean1"], params["var1"])                     # (mid, 1)
    s2, t2 = fold(params["b2"], params["g2"], params["beta2"],
                  params["mean2"], params["var2"])                     # (Cout, 1)

    prelu = jnp.asarray([params["a1"], params["a2"]], f32)             # (2,) -> SMEM

    # Lane-pack the batch tile: (G, C, B*L) so every matmul and the output
    # store in the kernel are lane-dense.
    x1_p = jnp.transpose(x1.astype(cdt).reshape(G, B, C1, L1),
                         (0, 2, 1, 3)).reshape(G, C1, BL1)
    x2_p = jnp.transpose(x2.astype(cdt).reshape(G, B, C2, L2),
                         (0, 2, 1, 3)).reshape(G, C2, BL2)

    def _up_kernel(x1_ref, x2_ref, ac_ref, alemb_ref,
                   w1a_ref, w1b_ref, s1_ref, t1_ref,
                   w2_ref, s2_ref, t2_ref, prelu_ref, o_ref):
        bl2 = o_ref.shape[2]                         # packed lane width B*L2

        # Per-batch conv boundary masks: built ONCE, reused by both convs.
        col = lax.broadcasted_iota(jnp.int32, (1, bl2), 1)
        not_first = (col % L2) != 0                  # left edge of each batch
        not_last = (col % L2) != (L2 - 1)            # right edge of each batch

        a1 = prelu_ref[0]                            # PReLU slopes (SMEM scalars)
        a2 = prelu_ref[1]

        x1v = x1_ref[0]                              # (C1, B*L1)
        x2v = x2_ref[0]                              # (C2, B*L2)

        # Bilinear 2x upsample (align_corners=True) fused with the lane F.pad
        # and batch packing:  up = A_c @ x1 @ AL_emb   -> (2*C1, B*L2)
        up_c = jnp.dot(ac_ref[...], x1v, preferred_element_type=f32)
        up = jnp.dot(up_c.astype(alemb_ref.dtype), alemb_ref[...],
                     preferred_element_type=f32).astype(w1b_ref.dtype)

        def conv3_combine(p0, p1, p2):
            # K=3 'same' conv from tap products: +/-1 lane shift via XLU roll,
            # zeroing the per-batch boundary contributions of the packed layout.
            lft = jnp.where(not_first, pltpu.roll(p0, 1, 1), 0.0)
            rgt = jnp.where(not_last, pltpu.roll(p2, bl2 - 1, 1), 0.0)
            return lft + p1 + rgt

        # Conv1: split channel contraction (x2 part + upsampled part) — no
        # concat scratch; channel-pad rows are zero so their weights are gone.
        taps1 = [jnp.dot(w1a_ref[k], x2v, preferred_element_type=f32) +
                 jnp.dot(w1b_ref[k], up, preferred_element_type=f32)
                 for k in range(3)]
        h = conv3_combine(*taps1)                    # (mid, B*L2) f32
        h = h * s1_ref[...] + t1_ref[...]            # folded conv bias + BN
        h = jnp.where(h >= 0.0, h, a1 * h)           # PReLU

        # Conv2.
        hc = h.astype(w2_ref.dtype)
        taps2 = [jnp.dot(w2_ref[k], hc, preferred_element_type=f32)
                 for k in range(3)]
        y = conv3_combine(*taps2)                    # (Cout, B*L2) f32
        y = y * s2_ref[...] + t2_ref[...]
        y = jnp.where(y >= 0.0, y, a2 * y)

        o_ref[0] = y.astype(o_ref.dtype)             # lane-dense store

    out_p = pl.pallas_call(
        _up_kernel,
        out_shape=jax.ShapeDtypeStruct((G, Cout, BL2), x2.dtype),
        grid_spec=pltpu.PrefetchScalarGridSpec(
            num_scalar_prefetch=0,
            grid=(G,),
            in_specs=[
                pl.BlockSpec((1, C1, BL1), lambda i: (i, 0, 0)),
                pl.BlockSpec((1, C2, BL2), lambda i: (i, 0, 0)),
                pl.BlockSpec((C1u, C1), lambda i: (0, 0)),
                pl.BlockSpec((BL1, BL2), lambda i: (0, 0)),
                pl.BlockSpec((3, mid, C2), lambda i: (0, 0, 0)),
                pl.BlockSpec((3, mid, C1u), lambda i: (0, 0, 0)),
                pl.BlockSpec((mid, 1), lambda i: (0, 0)),
                pl.BlockSpec((mid, 1), lambda i: (0, 0)),
                pl.BlockSpec((3, Cout, mid), lambda i: (0, 0, 0)),
                pl.BlockSpec((Cout, 1), lambda i: (0, 0)),
                pl.BlockSpec((Cout, 1), lambda i: (0, 0)),
                pl.BlockSpec(memory_space=pltpu.MemorySpace.SMEM),   # PReLU slopes
            ],
            out_specs=pl.BlockSpec((1, Cout, BL2), lambda i: (i, 0, 0)),
        ),
        compiler_params=pltpu.CompilerParams(
            dimension_semantics=("parallel",)),
    )(x1_p, x2_p, a_c, al_emb, w1a, w1b, s1, t1, w2t, s2, t2, prelu)

    return jnp.transpose(out_p.reshape(G, Cout, B, L2),
                         (0, 2, 1, 3)).reshape(N, Cout, L2)


# ----------------------------- pure-JAX reference -----------------------------

def _bilinear_up2_align_corners(img):
    """(N, H, W) -> (N, 2H, 2W), PyTorch bilinear upsample, align_corners=True."""
    def interp(x, axis):
        n_in = x.shape[axis]
        n_out = 2 * n_in
        if n_in == 1:
            return jnp.concatenate([x, x], axis=axis)
        pos = jnp.arange(n_out, dtype=jnp.float32) * (n_in - 1) / (n_out - 1)
        lo = jnp.clip(jnp.floor(pos).astype(jnp.int32), 0, n_in - 2)
        frac = pos - lo.astype(jnp.float32)
        x_lo = jnp.take(x, lo, axis=axis)
        x_hi = jnp.take(x, lo + 1, axis=axis)
        shape = [1] * x.ndim
        shape[axis] = n_out
        return x_lo * (1.0 - frac.reshape(shape)) + x_hi * frac.reshape(shape)
    return interp(interp(img, 1), 2)


def _up_reference(x1, x2, p, eps=1e-5):
    up = _bilinear_up2_align_corners(x1)
    _, C2, L2 = x2.shape
    _, C1u, L1u = up.shape
    dY, dX = C2 - C1u, L2 - L1u
    up = jnp.pad(up, ((0, 0), (dY // 2, dY - dY // 2), (dX // 2, dX - dX // 2)))
    x = jnp.concatenate([x2, up], axis=1)

    def conv_bn_prelu(x, w, b, g, beta, mean, var, a):
        y = lax.conv_general_dilated(x, w, (1,), [(1, 1)],
                                     dimension_numbers=("NCH", "OIH", "NCH"))
        y = y + b[None, :, None]
        y = (y - mean[None, :, None]) / jnp.sqrt(var[None, :, None] + eps)
        y = y * g[None, :, None] + beta[None, :, None]
        return jnp.where(y >= 0.0, y, a * y)

    h = conv_bn_prelu(x, p["w1"], p["b1"], p["g1"], p["beta1"],
                      p["mean1"], p["var1"], p["a1"])
    return conv_bn_prelu(h, p["w2"], p["b2"], p["g2"], p["beta2"],
                         p["mean2"], p["var2"], p["a2"])


if __name__ == "__main__":
    key = jax.random.PRNGKey(0)
    ks = jax.random.split(key, 12)

    # Up(in_channels=12, out_channels=4, bilinear=True):
    #   x1: (N, 2, 6)  --bilinear 2x on (C, L)-->  (N, 4, 12)
    #   F.pad to x2's (6, 16) (top=1, left=2) --cat--> (N, 12, 16); mid = 12//2.
    N, C1, L1 = 16, 2, 6
    C2, L2 = 6, 16
    Cin, mid, Cout = 2 * C2, (2 * C2) // 2, 4

    x1 = jax.random.normal(ks[0], (N, C1, L1), dtype=jnp.float32)
    x2 = jax.random.normal(ks[1], (N, C2, L2), dtype=jnp.float32)

    params = dict(
        w1=0.3 * jax.random.normal(ks[2], (mid, Cin, 3), dtype=jnp.float32),
        b1=0.1 * jax.random.normal(ks[3], (mid,), dtype=jnp.float32),
        g1=1.0 + 0.1 * jax.random.normal(ks[4], (mid,), dtype=jnp.float32),
        beta1=0.1 * jax.random.normal(ks[5], (mid,), dtype=jnp.float32),
        mean1=0.1 * jax.random.normal(ks[6], (mid,), dtype=jnp.float32),
        var1=jax.random.uniform(ks[7], (mid,), dtype=jnp.float32,
                                minval=0.5, maxval=1.5),
        a1=jnp.float32(0.25),
        w2=0.3 * jax.random.normal(ks[8], (Cout, mid, 3), dtype=jnp.float32),
        b2=0.1 * jax.random.normal(ks[9], (Cout,), dtype=jnp.float32),
        g2=1.0 + 0.1 * jax.random.normal(ks[10], (Cout,), dtype=jnp.float32),
        beta2=0.1 * jax.random.normal(ks[11], (Cout,), dtype=jnp.float32),
        mean2=jnp.zeros((Cout,), jnp.float32),
        var2=jnp.ones((Cout,), jnp.float32),
        a2=jnp.float32(0.25),
    )

    # batch_tile auto-picks 8 -> grid (2,) "parallel" steps, 128-lane blocks.
    out = up_forward(x1, x2, params)
    out = jax.block_until_ready(out)

    ref = _up_reference(x1, x2, params)
    assert out.shape == (N, Cout, L2)
    assert jnp.allclose(out, ref, atol=1e-4, rtol=1e-4), \
        float(jnp.max(jnp.abs(out - ref)))

    print("KERNEL_OK")
</pallas_src>

<mosaic_0001>
module attributes {stable_mosaic.version = 11 : i64} {
  func.func @_up_kernel(%arg0: i32, %arg1: memref<1x2x48xf32, #tpu.memory_space<vmem>>, %arg2: memref<1x6x128xf32, #tpu.memory_space<vmem>>, %arg3: memref<4x2xf32, #tpu.memory_space<vmem>>, %arg4: memref<48x128xf32, #tpu.memory_space<vmem>>, %arg5: memref<3x6x6xf32, #tpu.memory_space<vmem>>, %arg6: memref<3x6x4xf32, #tpu.memory_space<vmem>>, %arg7: memref<6x1xf32, #tpu.memory_space<vmem>>, %arg8: memref<6x1xf32, #tpu.memory_space<vmem>>, %arg9: memref<3x4x6xf32, #tpu.memory_space<vmem>>, %arg10: memref<4x1xf32, #tpu.memory_space<vmem>>, %arg11: memref<4x1xf32, #tpu.memory_space<vmem>>, %arg12: memref<2xf32, #tpu.memory_space<smem>>, %arg13: memref<1x4x128xf32, #tpu.memory_space<vmem>>) attributes {dimension_semantics = [#tpu.dimension_semantics<parallel>], iteration_bounds = array<i64: 2>, scalar_prefetch = 0 : i64, scratch_operands = 0 : i64, tpu.core_type = #tpu.core_type<tc>, window_params = [{transform_indices = @transform_0, window_bounds = array<i64: 1, 2, 48>}, {transform_indices = @transform_1, window_bounds = array<i64: 1, 6, 128>}, {pipeline_mode = #tpu.pipeline_mode<synchronous>, transform_indices = @transform_2, window_bounds = array<i64: 4, 2>}, {pipeline_mode = #tpu.pipeline_mode<synchronous>, transform_indices = @transform_3, window_bounds = array<i64: 48, 128>}, {pipeline_mode = #tpu.pipeline_mode<synchronous>, transform_indices = @transform_4, window_bounds = array<i64: 3, 6, 6>}, {pipeline_mode = #tpu.pipeline_mode<synchronous>, transform_indices = @transform_5, window_bounds = array<i64: 3, 6, 4>}, {pipeline_mode = #tpu.pipeline_mode<synchronous>, transform_indices = @transform_6, window_bounds = array<i64: 6, 1>}, {pipeline_mode = #tpu.pipeline_mode<synchronous>, transform_indices = @transform_7, window_bounds = array<i64: 6, 1>}, {pipeline_mode = #tpu.pipeline_mode<synchronous>, transform_indices = @transform_8, window_bounds = array<i64: 3, 4, 6>}, {pipeline_mode = #tpu.pipeline_mode<synchronous>, transform_indices = @transform_9, window_bounds = array<i64: 4, 1>}, {pipeline_mode = #tpu.pipeline_mode<synchronous>, transform_indices = @transform_10, window_bounds = array<i64: 4, 1>}, {transform_indices = @transform_11, window_bounds = array<i64: 2>}, {transform_indices = @transform_12, window_bounds = array<i64: 1, 4, 128>}]} {
    %0 = tpu.iota {dimensions = array<i32: 1>} : vector<1x128xi32>
    %c16_i32 = arith.constant 16 : i32
    %c0_i32 = arith.constant 0 : i32
    %1 = arith.cmpi eq, %c16_i32, %c0_i32 : i32
    %c1_i32 = arith.constant 1 : i32
    %2 = arith.select %1, %c1_i32, %c16_i32 : i32
    %3 = vector.broadcast %2 : i32 to vector<1x128xi32>
    %4 = arith.remsi %0, %3 : vector<1x128xi32>
    %c0_i32_0 = arith.constant 0 : i32
    %5 = vector.broadcast %c0_i32_0 : i32 to vector<1x128xi32>
    %6 = arith.cmpi ne, %4, %5 : vector<1x128xi32>
    %c0_i32_1 = arith.constant 0 : i32
    %7 = vector.broadcast %c0_i32_1 : i32 to vector<1x128xi32>
    %8 = arith.cmpi slt, %4, %7 : vector<1x128xi32>
    %c0_i32_2 = arith.constant 0 : i32
    %9 = arith.cmpi slt, %2, %c0_i32_2 : i32
    %10 = vector.broadcast %9 : i1 to vector<1x128xi1>
    %11 = vector.broadcast %10 : vector<1x128xi1> to vector<1x128xi1>
    %12 = arith.xori %8, %11 : vector<1x128xi1>
    %13 = arith.andi %12, %6 : vector<1x128xi1>
    %14 = vector.broadcast %2 : i32 to vector<1x128xi32>
    %15 = arith.addi %4, %14 : vector<1x128xi32>
    %16 = arith.select %13, %15, %4 : vector<1x128xi1>, vector<1x128xi32>
    %c0_i32_3 = arith.constant 0 : i32
    %17 = vector.broadcast %c0_i32_3 : i32 to vector<1x128xi32>
    %18 = arith.cmpi ne, %16, %17 : vector<1x128xi32>
    %c16_i32_4 = arith.constant 16 : i32
    %c0_i32_5 = arith.constant 0 : i32
    %19 = arith.cmpi eq, %c16_i32_4, %c0_i32_5 : i32
    %c1_i32_6 = arith.constant 1 : i32
    %20 = arith.select %19, %c1_i32_6, %c16_i32_4 : i32
    %21 = vector.broadcast %20 : i32 to vector<1x128xi32>
    %22 = arith.remsi %0, %21 : vector<1x128xi32>
    %c0_i32_7 = arith.constant 0 : i32
    %23 = vector.broadcast %c0_i32_7 : i32 to vector<1x128xi32>
    %24 = arith.cmpi ne, %22, %23 : vector<1x128xi32>
    %c0_i32_8 = arith.constant 0 : i32
    %25 = vector.broadcast %c0_i32_8 : i32 to vector<1x128xi32>
    %26 = arith.cmpi slt, %22, %25 : vector<1x128xi32>
    %c0_i32_9 = arith.constant 0 : i32
    %27 = arith.cmpi slt, %20, %c0_i32_9 : i32
    %28 = vector.broadcast %27 : i1 to vector<1x128xi1>
    %29 = vector.broadcast %28 : vector<1x128xi1> to vector<1x128xi1>
    %30 = arith.xori %26, %29 : vector<1x128xi1>
    %31 = arith.andi %30, %24 : vector<1x128xi1>
    %32 = vector.broadcast %20 : i32 to vector<1x128xi32>
    %33 = arith.addi %22, %32 : vector<1x128xi32>
    %34 = arith.select %31, %33, %22 : vector<1x128xi1>, vector<1x128xi32>
    %c15_i32 = arith.constant 15 : i32
    %35 = vector.broadcast %c15_i32 : i32 to vector<1x128xi32>
    %36 = arith.cmpi ne, %34, %35 : vector<1x128xi32>
    %c0 = arith.constant 0 : index
    %37 = memref.load %arg12[%c0] : memref<2xf32, #tpu.memory_space<smem>>
    %c1 = arith.constant 1 : index
    %38 = memref.load %arg12[%c1] : memref<2xf32, #tpu.memory_space<smem>>
    %c0_10 = arith.constant 0 : index
    %c0_11 = arith.constant 0 : index
    %c0_12 = arith.constant 0 : index
    %39 = vector.load %arg1[%c0_10, %c0_11, %c0_12] : memref<1x2x48xf32, #tpu.memory_space<vmem>>, vector<1x2x48xf32>
    %40 = vector.shape_cast %39 : vector<1x2x48xf32> to vector<2x48xf32>
    %c0_13 = arith.constant 0 : index
    %c0_14 = arith.constant 0 : index
    %c0_15 = arith.constant 0 : index
    %41 = vector.load %arg2[%c0_13, %c0_14, %c0_15] : memref<1x6x128xf32, #tpu.memory_space<vmem>>, vector<1x6x128xf32>
    %42 = vector.shape_cast %41 : vector<1x6x128xf32> to vector<6x128xf32>
    %c0_16 = arith.constant 0 : index
    %c0_17 = arith.constant 0 : index
    %43 = vector.load %arg3[%c0_16, %c0_17] : memref<4x2xf32, #tpu.memory_space<vmem>>, vector<4x2xf32>
    %cst = arith.constant dense<0.000000e+00> : vector<4x48xf32>
    %44 = tpu.matmul %43, %40, %cst {dimension_numbers = #tpu.dot_dimension_numbers<[1], [0], [0], [1], [0, 0, 1, 1], [], []>} : vector<4x2xf32>, vector<2x48xf32>, vector<4x48xf32> -> vector<4x48xf32>
    %c0_18 = arith.constant 0 : index
    %c0_19 = arith.constant 0 : index
    %45 = vector.load %arg4[%c0_18, %c0_19] : memref<48x128xf32, #tpu.memory_space<vmem>>, vector<48x128xf32>
    %cst_20 = arith.constant dense<0.000000e+00> : vector<4x128xf32>
    %46 = tpu.matmul %44, %45, %cst_20 {dimension_numbers = #tpu.dot_dimension_numbers<[1], [0], [0], [1], [0, 0, 1, 1], [], []>} : vector<4x48xf32>, vector<48x128xf32>, vector<4x128xf32> -> vector<4x128xf32>
    %c0_21 = arith.constant 0 : index
    %c0_22 = arith.constant 0 : index
    %c0_23 = arith.constant 0 : index
    %47 = vector.load %arg5[%c0_21, %c0_22, %c0_23] : memref<3x6x6xf32, #tpu.memory_space<vmem>>, vector<1x6x6xf32>
    %48 = vector.shape_cast %47 : vector<1x6x6xf32> to vector<6x6xf32>
    %cst_24 = arith.constant dense<0.000000e+00> : vector<6x128xf32>
    %49 = tpu.matmul %48, %42, %cst_24 {dimension_numbers = #tpu.dot_dimension_numbers<[1], [0], [0], [1], [0, 0, 1, 1], [], []>} : vector<6x6xf32>, vector<6x128xf32>, vector<6x128xf32> -> vector<6x128xf32>
    %c0_25 = arith.constant 0 : index
    %c0_26 = arith.constant 0 : index
    %c0_27 = arith.constant 0 : index
    %50 = vector.load %arg6[%c0_25, %c0_26, %c0_27] : memref<3x6x4xf32, #tpu.memory_space<vmem>>, vector<1x6x4xf32>
    %51 = vector.shape_cast %50 : vector<1x6x4xf32> to vector<6x4xf32>
    %cst_28 = arith.constant dense<0.000000e+00> : vector<6x128xf32>
    %52 = tpu.matmul %51, %46, %cst_28 {dimension_numbers = #tpu.dot_dimension_numbers<[1], [0], [0], [1], [0, 0, 1, 1], [], []>} : vector<6x4xf32>, vector<4x128xf32>, vector<6x128xf32> -> vector<6x128xf32>
    %53 = arith.addf %49, %52 : vector<6x128xf32>
    %c1_29 = arith.constant 1 : index
    %c0_30 = arith.constant 0 : index
    %c0_31 = arith.constant 0 : index
    %54 = vector.load %arg5[%c1_29, %c0_30, %c0_31] : memref<3x6x6xf32, #tpu.memory_space<vmem>>, vector<1x6x6xf32>
    %55 = vector.shape_cast %54 : vector<1x6x6xf32> to vector<6x6xf32>
    %cst_32 = arith.constant dense<0.000000e+00> : vector<6x128xf32>
    %56 = tpu.matmul %55, %42, %cst_32 {dimension_numbers = #tpu.dot_dimension_numbers<[1], [0], [0], [1], [0, 0, 1, 1], [], []>} : vector<6x6xf32>, vector<6x128xf32>, vector<6x128xf32> -> vector<6x128xf32>
    %c1_33 = arith.constant 1 : index
    %c0_34 = arith.constant 0 : index
    %c0_35 = arith.constant 0 : index
    %57 = vector.load %arg6[%c1_33, %c0_34, %c0_35] : memref<3x6x4xf32, #tpu.memory_space<vmem>>, vector<1x6x4xf32>
    %58 = vector.shape_cast %57 : vector<1x6x4xf32> to vector<6x4xf32>
    %cst_36 = arith.constant dense<0.000000e+00> : vector<6x128xf32>
    %59 = tpu.matmul %58, %46, %cst_36 {dimension_numbers = #tpu.dot_dimension_numbers<[1], [0], [0], [1], [0, 0, 1, 1], [], []>} : vector<6x4xf32>, vector<4x128xf32>, vector<6x128xf32> -> vector<6x128xf32>
    %60 = arith.addf %56, %59 : vector<6x128xf32>
    %c2 = arith.constant 2 : index
    %c0_37 = arith.constant 0 : index
    %c0_38 = arith.constant 0 : index
    %61 = vector.load %arg5[%c2, %c0_37, %c0_38] : memref<3x6x6xf32, #tpu.memory_space<vmem>>, vector<1x6x6xf32>
    %62 = vector.shape_cast %61 : vector<1x6x6xf32> to vector<6x6xf32>
    %cst_39 = arith.constant dense<0.000000e+00> : vector<6x128xf32>
    %63 = tpu.matmul %62, %42, %cst_39 {dimension_numbers = #tpu.dot_dimension_numbers<[1], [0], [0], [1], [0, 0, 1, 1], [], []>} : vector<6x6xf32>, vector<6x128xf32>, vector<6x128xf32> -> vector<6x128xf32>
    %c2_40 = arith.constant 2 : index
    %c0_41 = arith.constant 0 : index
    %c0_42 = arith.constant 0 : index
    %64 = vector.load %arg6[%c2_40, %c0_41, %c0_42] : memref<3x6x4xf32, #tpu.memory_space<vmem>>, vector<1x6x4xf32>
    %65 = vector.shape_cast %64 : vector<1x6x4xf32> to vector<6x4xf32>
    %cst_43 = arith.constant dense<0.000000e+00> : vector<6x128xf32>
    %66 = tpu.matmul %65, %46, %cst_43 {dimension_numbers = #tpu.dot_dimension_numbers<[1], [0], [0], [1], [0, 0, 1, 1], [], []>} : vector<6x4xf32>, vector<4x128xf32>, vector<6x128xf32> -> vector<6x128xf32>
    %67 = arith.addf %63, %66 : vector<6x128xf32>
    %c1_i32_44 = arith.constant 1 : i32
    %68 = tpu.dynamic_rotate %53 by %c1_i32_44 dim 1 : vector<6x128xf32>, i32 -> vector<6x128xf32>
    %cst_45 = arith.constant 0.000000e+00 : f32
    %69 = vector.shape_cast %18 : vector<1x128xi1> to vector<1x128xi1>
    %70 = vector.broadcast %69 : vector<1x128xi1> to vector<6x128xi1>
    %71 = vector.broadcast %cst_45 : f32 to vector<6x128xf32>
    %72 = arith.select %70, %68, %71 : vector<6x128xi1>, vector<6x128xf32>
    %c127_i32 = arith.constant 127 : i32
    %73 = tpu.dynamic_rotate %67 by %c127_i32 dim 1 : vector<6x128xf32>, i32 -> vector<6x128xf32>
    %cst_46 = arith.constant 0.000000e+00 : f32
    %74 = vector.shape_cast %36 : vector<1x128xi1> to vector<1x128xi1>
    %75 = vector.broadcast %74 : vector<1x128xi1> to vector<6x128xi1>
    %76 = vector.broadcast %cst_46 : f32 to vector<6x128xf32>
    %77 = arith.select %75, %73, %76 : vector<6x128xi1>, vector<6x128xf32>
    %78 = arith.addf %72, %60 : vector<6x128xf32>
    %79 = arith.addf %78, %77 : vector<6x128xf32>
    %c0_47 = arith.constant 0 : index
    %c0_48 = arith.constant 0 : index
    %80 = vector.load %arg7[%c0_47, %c0_48] : memref<6x1xf32, #tpu.memory_space<vmem>>, vector<6x1xf32>
    %81 = vector.broadcast %80 : vector<6x1xf32> to vector<6x128xf32>
    %82 = arith.mulf %79, %81 : vector<6x128xf32>
    %c0_49 = arith.constant 0 : index
    %c0_50 = arith.constant 0 : index
    %83 = vector.load %arg8[%c0_49, %c0_50] : memref<6x1xf32, #tpu.memory_space<vmem>>, vector<6x1xf32>
    %84 = vector.broadcast %83 : vector<6x1xf32> to vector<6x128xf32>
    %85 = arith.addf %82, %84 : vector<6x128xf32>
    %cst_51 = arith.constant 0.000000e+00 : f32
    %86 = vector.broadcast %cst_51 : f32 to vector<6x128xf32>
    %87 = arith.cmpf oge, %85, %86 : vector<6x128xf32>
    %88 = vector.broadcast %37 : f32 to vector<6x128xf32>
    %89 = arith.mulf %88, %85 : vector<6x128xf32>
    %90 = arith.select %87, %85, %89 : vector<6x128xi1>, vector<6x128xf32>
    %c0_52 = arith.constant 0 : index
    %c0_53 = arith.constant 0 : index
    %c0_54 = arith.constant 0 : index
    %91 = vector.load %arg9[%c0_52, %c0_53, %c0_54] : memref<3x4x6xf32, #tpu.memory_space<vmem>>, vector<1x4x6xf32>
    %92 = vector.shape_cast %91 : vector<1x4x6xf32> to vector<4x6xf32>
    %cst_55 = arith.constant dense<0.000000e+00> : vector<4x128xf32>
    %93 = tpu.matmul %92, %90, %cst_55 {dimension_numbers = #tpu.dot_dimension_numbers<[1], [0], [0], [1], [0, 0, 1, 1], [], []>} : vector<4x6xf32>, vector<6x128xf32>, vector<4x128xf32> -> vector<4x128xf32>
    %c1_56 = arith.constant 1 : index
    %c0_57 = arith.constant 0 : index
    %c0_58 = arith.constant 0 : index
    %94 = vector.load %arg9[%c1_56, %c0_57, %c0_58] : memref<3x4x6xf32, #tpu.memory_space<vmem>>, vector<1x4x6xf32>
    %95 = vector.shape_cast %94 : vector<1x4x6xf32> to vector<4x6xf32>
    %cst_59 = arith.constant dense<0.000000e+00> : vector<4x128xf32>
    %96 = tpu.matmul %95, %90, %cst_59 {dimension_numbers = #tpu.dot_dimension_numbers<[1], [0], [0], [1], [0, 0, 1, 1], [], []>} : vector<4x6xf32>, vector<6x128xf32>, vector<4x128xf32> -> vector<4x128xf32>
    %c2_60 = arith.constant 2 : index
    %c0_61 = arith.constant 0 : index
    %c0_62 = arith.constant 0 : index
    %97 = vector.load %arg9[%c2_60, %c0_61, %c0_62] : memref<3x4x6xf32, #tpu.memory_space<vmem>>, vector<1x4x6xf32>
    %98 = vector.shape_cast %97 : vector<1x4x6xf32> to vector<4x6xf32>
    %cst_63 = arith.constant dense<0.000000e+00> : vector<4x128xf32>
    %99 = tpu.matmul %98, %90, %cst_63 {dimension_numbers = #tpu.dot_dimension_numbers<[1], [0], [0], [1], [0, 0, 1, 1], [], []>} : vector<4x6xf32>, vector<6x128xf32>, vector<4x128xf32> -> vector<4x128xf32>
    %c1_i32_64 = arith.constant 1 : i32
    %100 = tpu.dynamic_rotate %93 by %c1_i32_64 dim 1 : vector<4x128xf32>, i32 -> vector<4x128xf32>
    %cst_65 = arith.constant 0.000000e+00 : f32
    %101 = vector.shape_cast %18 : vector<1x128xi1> to vector<1x128xi1>
    %102 = vector.broadcast %101 : vector<1x128xi1> to vector<4x128xi1>
    %103 = vector.broadcast %cst_65 : f32 to vector<4x128xf32>
    %104 = arith.select %102, %100, %103 : vector<4x128xi1>, vector<4x128xf32>
    %c127_i32_66 = arith.constant 127 : i32
    %105 = tpu.dynamic_rotate %99 by %c127_i32_66 dim 1 : vector<4x128xf32>, i32 -> vector<4x128xf32>
    %cst_67 = arith.constant 0.000000e+00 : f32
    %106 = vector.shape_cast %36 : vector<1x128xi1> to vector<1x128xi1>
    %107 = vector.broadcast %106 : vector<1x128xi1> to vector<4x128xi1>
    %108 = vector.broadcast %cst_67 : f32 to vector<4x128xf32>
    %109 = arith.select %107, %105, %108 : vector<4x128xi1>, vector<4x128xf32>
    %110 = arith.addf %104, %96 : vector<4x128xf32>
    %111 = arith.addf %110, %109 : vector<4x128xf32>
    %c0_68 = arith.constant 0 : index
    %c0_69 = arith.constant 0 : index
    %112 = vector.load %arg10[%c0_68, %c0_69] : memref<4x1xf32, #tpu.memory_space<vmem>>, vector<4x1xf32>
    %113 = vector.broadcast %112 : vector<4x1xf32> to vector<4x128xf32>
    %114 = arith.mulf %111, %113 : vector<4x128xf32>
    %c0_70 = arith.constant 0 : index
    %c0_71 = arith.constant 0 : index
    %115 = vector.load %arg11[%c0_70, %c0_71] : memref<4x1xf32, #tpu.memory_space<vmem>>, vector<4x1xf32>
    %116 = vector.broadcast %115 : vector<4x1xf32> to vector<4x128xf32>
    %117 = arith.addf %114, %116 : vector<4x128xf32>
    %cst_72 = arith.constant 0.000000e+00 : f32
    %118 = vector.broadcast %cst_72 : f32 to vector<4x128xf32>
    %119 = arith.cmpf oge, %117, %118 : vector<4x128xf32>
    %120 = vector.broadcast %38 : f32 to vector<4x128xf32>
    %121 = arith.mulf %120, %117 : vector<4x128xf32>
    %122 = arith.select %119, %117, %121 : vector<4x128xi1>, vector<4x128xf32>
    %c0_73 = arith.constant 0 : index
    %c0_74 = arith.constant 0 : index
    %c0_75 = arith.constant 0 : index
    %123 = vector.load %arg13[%c0_73, %c0_74, %c0_75] : memref<1x4x128xf32, #tpu.memory_space<vmem>>, vector<1x4x128xf32>
    %124 = vector.shape_cast %123 : vector<1x4x128xf32> to vector<4x128xf32>
    %125 = vector.shape_cast %122 : vector<4x128xf32> to vector<1x4x128xf32>
    tpu.vector_store %arg13[%c0_73, %c0_74, %c0_75], %125 {strides = array<i32>} : memref<1x4x128xf32, #tpu.memory_space<vmem>>, vector<1x4x128xf32>,
    return
  }
  func.func @transform_0(%arg0: i32) -> (i32, i32, i32) {
    %c0_i32 = arith.constant 0 : i32
    %c0_i32_0 = arith.constant 0 : i32
    %c0_i32_1 = arith.constant 0 : i32
    return %arg0, %c0_i32, %c0_i32_0 : i32, i32, i32
  }
  func.func @transform_1(%arg0: i32) -> (i32, i32, i32) {
    %c0_i32 = arith.constant 0 : i32
    %c0_i32_0 = arith.constant 0 : i32
    %c0_i32_1 = arith.constant 0 : i32
    return %arg0, %c0_i32, %c0_i32_0 : i32, i32, i32
  }
  func.func @transform_2(%arg0: i32) -> (i32, i32) {
    %c0_i32 = arith.constant 0 : i32
    %c0_i32_0 = arith.constant 0 : i32
    %c0_i32_1 = arith.constant 0 : i32
    return %c0_i32, %c0_i32_0 : i32, i32
  }
  func.func @transform_3(%arg0: i32) -> (i32, i32) {
    %c0_i32 = arith.constant 0 : i32
    %c0_i32_0 = arith.constant 0 : i32
    %c0_i32_1 = arith.constant 0 : i32
    return %c0_i32, %c0_i32_0 : i32, i32
  }
  func.func @transform_4(%arg0: i32) -> (i32, i32, i32) {
    %c0_i32 = arith.constant 0 : i32
    %c0_i32_0 = arith.constant 0 : i32
    %c0_i32_1 = arith.constant 0 : i32
    %c0_i32_2 = arith.constant 0 : i32
    return %c0_i32, %c0_i32_0, %c0_i32_1 : i32, i32, i32
  }
  func.func @transform_5(%arg0: i32) -> (i32, i32, i32) {
    %c0_i32 = arith.constant 0 : i32
    %c0_i32_0 = arith.constant 0 : i32
    %c0_i32_1 = arith.constant 0 : i32
    %c0_i32_2 = arith.constant 0 : i32
    return %c0_i32, %c0_i32_0, %c0_i32_1 : i32, i32, i32
  }
  func.func @transform_6(%arg0: i32) -> (i32, i32) {
    %c0_i32 = arith.constant 0 : i32
    %c0_i32_0 = arith.constant 0 : i32
    %c0_i32_1 = arith.constant 0 : i32
    return %c0_i32, %c0_i32_0 : i32, i32
  }
  func.func @transform_7(%arg0: i32) -> (i32, i32) {
    %c0_i32 = arith.constant 0 : i32
    %c0_i32_0 = arith.constant 0 : i32
    %c0_i32_1 = arith.constant 0 : i32
    return %c0_i32, %c0_i32_0 : i32, i32
  }
  func.func @transform_8(%arg0: i32) -> (i32, i32, i32) {
    %c0_i32 = arith.constant 0 : i32
    %c0_i32_0 = arith.constant 0 : i32
    %c0_i32_1 = arith.constant 0 : i32
    %c0_i32_2 = arith.constant 0 : i32
    return %c0_i32, %c0_i32_0, %c0_i32_1 : i32, i32, i32
  }
  func.func @transform_9(%arg0: i32) -> (i32, i32) {
    %c0_i32 = arith.constant 0 : i32
    %c0_i32_0 = arith.constant 0 : i32
    %c0_i32_1 = arith.constant 0 : i32
    return %c0_i32, %c0_i32_0 : i32, i32
  }
  func.func @transform_10(%arg0: i32) -> (i32, i32) {
    %c0_i32 = arith.constant 0 : i32
    %c0_i32_0 = arith.constant 0 : i32
    %c0_i32_1 = arith.constant 0 : i32
    return %c0_i32, %c0_i32_0 : i32, i32
  }
  func.func @transform_11(%arg0: i32) -> i32 {
    %c0_i32 = arith.constant 0 : i32
    %c0_i32_0 = arith.constant 0 : i32
    return %c0_i32 : i32
  }
  func.func @transform_12(%arg0: i32) -> (i32, i32, i32) {
    %c0_i32 = arith.constant 0 : i32
    %c0_i32_0 = arith.constant 0 : i32
    %c0_i32_1 = arith.constant 0 : i32
    return %arg0, %c0_i32, %c0_i32_0 : i32, i32, i32
  }
}

</mosaic_0001>

<bundles_post_ra>
// kernel: tpu_custom_call.1
= control target key start
LH: loop header
LB: loop body
LE: loop exit
PB: predicated region body
PF: predicated region fallthrough
CT: control target
= control target key end

     0   :  { %s2221_s0 = inlined_call_operand.hbm [shape: f32[2,2,48], index: 0, kind: input, shape index: {}]   ;;  %s2222_s1 = inlined_call_operand.vmem [shape: f32[2,6,128], index: 1, kind: input, shape index: {}]   ;;  %s2223_s2 = inlined_call_operand.vmem [shape: f32[4,2], index: 2, kind: input, shape index: {}]   ;;  %s2224_s3 = inlined_call_operand.vmem [shape: f32[48,128], index: 3, kind: input, shape index: {}]   ;;  %s2225_s4 = inlined_call_operand.vmem [shape: f32[3,6,6], index: 4, kind: input, shape index: {}]   ;;  %s2226_s5 = inlined_call_operand.vmem [shape: f32[3,6,4], index: 5, kind: input, shape index: {}]   ;;  %s2227_s6 = inlined_call_operand.vmem [shape: f32[6,1], index: 6, kind: input, shape index: {}]   ;;  %s2228_s7 = inlined_call_operand.vmem [shape: f32[6,1], index: 7, kind: input, shape index: {}]   ;;  %s2229_s8 = inlined_call_operand.vmem [shape: f32[3,4,6], index: 8, kind: input, shape index: {}]   ;;  %s2230_s9 = inlined_call_operand.vmem [shape: f32[4,1], index: 9, kind: input, shape index: {}]   ;;  %s2231_s10 = inlined_call_operand.vmem [shape: f32[4,1], index: 10, kind: input, shape index: {}]   ;;  %s2232_s11 = inlined_call_operand.vmem [shape: f32[2], index: 11, kind: input, shape index: {}]   ;;  %s2233_s12 = inlined_call_operand.hbm [shape: f32[2,4,128], index: 12, kind: output, shape index: {}]  }
   0x1   :  { %2240 = sst [smem:[#allocation14_spill]] %s2232_s11 }
   0x2   :  { %17 = vsyncpa [#allocation3], 0 }
   0x3   :  { %19 = vsyncpa [#allocation3 + $0x1], 0 }
   0x4   :  { %20 = vsyncpa [#allocation5], 0 }
   0x5   :  { %21 = vsyncpa [#allocation4], 0 }
   0x6   :  { %23 = vsyncpa [#allocation4 + $0x1], 0  ;;  %s1893_s21 = smov 0   ;;  %s1895_s22 = smov 0  }
   0x7   :  { %s1897_s23 = smov 0   ;;  %s1899_s24 = smov 0  }
   0x8 LB: > { %2241 = sst [smem:[#allocation11_spill]] %s1813_s23  ;;  %s1914_s25 = sadd.s32 4294967295, %s1817_s24   ;;  %s1817_s24 = sphi %s1899_s24, %s2263_s24   ;;  %s1813_s23 = sphi %s1897_s23, %s2265_s23   ;;  %s1809_s22 = sphi %s1895_s22, %s2267_s22   ;;  %s1805_s21 = sphi %s1893_s21, %s2266_s21  }
   0x9   : > { %s1489_s26 = sadd.s32 4294967294, %s1817_s24   ;;  %p49_p0 = scmp.ne.s32.totalorder %s1809_s22, %s1805_s21 }
   0xa   : > { %p2234_p1 = scmp.eq.s32.totalorder %s1914_s25, 0  ;;  %p315_p3 = scmp.eq.s32.totalorder %s1489_s26, 1 }
   0xb   : > { %p1490_p5 = scmp.ge.s32.totalorder %s1817_s24, 1  ;;  %p322_p7 = scmp.lt.s32.totalorder %s1817_s24, 3 }
   0xc   : > { %p1923_p4 = por %p2234_p1, %p49_p0  ;;  %p1928_p6 = por %p315_p3, %p49_p0 }
   0xd   : > { %s2244_s11 = sld [smem:[#allocation14_spill]]  ;;  %p1936_p8 = pnand %p1490_p5, %p322_p7 }
   0xe   : > { %s2242_s27 = scalar_select %p1923_p4, 1, 0 }
   0xf   : > { %s2243_s28 = scalar_select %p1928_p6, 1, 0 }
  0x10   : > { %p1645_p10 = pneg %p1936_p8  ;;  %s1944_s15 = sadd.s32 1, %s1817_s24  }
  0x11   : > { %2246 = sst [smem:[#allocation12_spill]] %s1944_s15  ;;  %s33_s17 = ssub.s32 %s1817_s24, %s1944_s15 }
  0x12   : > { %p1948_p11 = pnand %p1645_p10, %p2234_p1  ;;  %p1954_p12 = scmp.eq.s32.totalorder %s33_s17, 0 }
  0x13   : > { %s362_s13 = sshll.u32 %s2244_s11, 4  ;;  %s36_s19 = sadd.s32 1, %s1813_s23  ;;  %s363_s13 = int_to_ptr.vmem [resolvable:$true] %s362_s13 }
  0x14   : > { %p43_p13 = scmp.ne.s32.totalorder %s1813_s23, %s1809_s22  ;;  %s1702_s20 = scalar_lea.vmem %s363_s13, 16 }
  0x15   : > { %p1703_p0 = scmp.ne.s32.totalorder %s363_s13, %s1702_s20  ;;  %p1704_p3 = pneg %p1948_p11 }
  0x16   : > { %p1710_p9 = scmp.lt.s32.totalorder %s363_s13, %s363_s13  ;;  %p1711_p2 = scmp.lt.s32.totalorder %s1702_s20, %s1702_s20 }
  0x17   : > { %p1705_p5 = pnand %p1704_p3, %p1703_p0 }
  0x18   : > { %p1712_p10 = por %p1711_p2, %p1710_p9 }
  0x19   : > { %p1706_p7 = pneg %p1705_p5 }
  0x1b   : > { %p1713_p1 = pnand %p1712_p10, %p1706_p7 }
  0x1d   : > { %1716 = shalt.err (!%p1713_p1)
}
  0x1e   : > { %s1819_s26 = smov [#allocation6]   ;;  %p44_p2 = scmp.eq.s32.totalorder %s1817_s24, 0 }
  0x1f   : > { %1648 = dma.vmem_to_smem (!%p1948_p11), %s363_s13, 16, %s1819_s26, [#allocation5]  }
  0x20   : > { %s1968_s29 = scalar_select %p1954_p12, %s1813_s23, %s36_s19  }
  0x21   : > { %p2250_p1 = scmp.eq.s32.totalorder %s1914_s25, 1  ;;  %p1658_p0 = scmp.lt.s32.totalorder %s1817_s24, 2 }
  0x22   : > { %2249 = sst [smem:[#allocation13_spill]] %s1968_s29  ;;  %s373_s16 = sand.u32 1, %s1813_s23  }
  0x23   : > { %p1976_p9 = por %p2250_p1, %p43_p13  ;;  %p45_p3 = por %p44_p2, %p43_p13 }
  0x24   : > { %s1493_s17 = sshll.u32 %s373_s16, 1  ;;  %s1494_s20 = sshll.u32 %s1817_s24, 5 }
  0x25   : > { %s2251_s30 = scalar_select %p1976_p9, 1, 0 }
  0x26   : > { %s1989_s13 = scalar_lea.hbm %s2221_s0, %s1494_s20  ;;  %s377_s18 = scalar_lea.vmem [#allocation2], %s1493_s17 }
  0x27   : > { %s384_s19 = sshll.u32 %s377_s18, 4  ;;  %p1991_p11 = pnand %p1658_p0, %p45_p3  ;;  %s1995_s19 = int_to_ptr.vmem [resolvable:$true] %s384_s19 }
  0x28   : > { %s374_s29 = scalar_lea.sflag [#allocation3], %s373_s16  ;;  %s1717_s23 = scalar_lea.hbm %s1989_s13, 32 }
  0x29   : > { %p1718_p12 = scmp.ne.s32.totalorder %s1989_s13, %s1717_s23  ;;  %p1719_p13 = pneg %p1991_p11 }
  0x2a   : > { %s1722_s17 = scalar_lea.hbm %s2221_s0, 64  ;;  %p1723_p10 = scmp.lt.u32.totalorder %s1989_s13, %s2221_s0 }
  0x2b   : > { %p1720_p5 = pnand %p1719_p13, %p1718_p12  ;;  %p1724_p2 = scmp.lt.u32.totalorder %s1722_s17, %s1717_s23 }
  0x2c   : > { %p1726_p0 = scmp.lt.u32.totalorder %s1717_s23, %s1989_s13 }
  0x2d   : > { %p1721_p7 = pneg %p1720_p5  ;;  %p1725_p1 = por %p1724_p2, %p1723_p10 }
  0x2f   : > { %p1727_p3 = por %p1726_p0, %p1725_p1 }
  0x31   : > { %p1728_p6 = pnand %p1727_p3, %p1721_p7 }
  0x33   : > { %1731 = shalt.err (!%p1728_p6)
}
  0x34   : > { %s1732_s16 = scalar_lea.vmem %s1995_s19, 32  ;;  %s1820_s11 = smov [#allocation2]  }
  0x35   : > { %p1733_p12 = scmp.ne.s32.totalorder %s1995_s19, %s1732_s16  ;;  %s1737_s15 = sshll.u32 %s1820_s11, 4  ;;  %s1738_s15 = int_to_ptr.vmem [resolvable:$false] %s1737_s15 }
  0x36   : > { %s1739_s20 = scalar_lea.vmem %s1738_s15, 64  ;;  %p1740_p4 = scmp.lt.s32.totalorder %s1995_s19, %s1738_s15 }
  0x37   : > { %p1735_p5 = pnand %p1733_p12, %p1719_p13  ;;  %p1741_p10 = scmp.lt.s32.totalorder %s1739_s20, %s1732_s16 }
  0x39   : > { %p1736_p9 = pneg %p1735_p5  ;;  %p1742_p2 = por %p1741_p10, %p1740_p4 }
  0x3b   : > { %p1743_p1 = pnand %p1742_p2, %p1736_p9 }
  0x3d   : > { %1746 = shalt.err (!%p1743_p1)
}
  0x3e   : > { %1652 = dma.hbm_to_vmem [thread:$0]  (!%p1991_p11), %s1989_s13, 32, %s1995_s19, %s374_s29  }
  0x3f   : > { %400 = sbr.rel (%p1936_p8) target bundleno = 1222 (0x4c6), region = 68  ;;  %s2025_s23 = sand.u32 (!%p1936_p8), 1, %s1809_s22  }
  0x40   : > { %s1496_s17 = sshll.u32 (!%p1936_p8), %s2025_s23, 1  ;;  %s403_s18 = scalar_lea.sflag (!%p1936_p8), [#allocation3], %s2025_s23 }
  0x41   : > { %s406_s16 = scalar_lea.vmem (!%p1936_p8), [#allocation2], %s1496_s17  ;;  %p2253_p4 = scmp.ne.s32.totalorder (!%p1936_p8), %s2242_s27, 0 }
  0x46   : > { %1792 = dma.done.wait (%p2253_p4), %s403_s18, 32  }
  0x47   : > { %1794 = vsyncadd (%p2253_p4), %s403_s18, 4294967264  ;;  %p2254_p6 = scmp.eq.s32.totalorder %s1914_s25, 0 }
  0x49   : > { %1796 = dma.done.wait (%p2254_p6), [#allocation5], 16   ;;  %p2255_p9 = pmov %p2254_p6 }
  0x4b   : > { %1798 = vsyncadd (%p2255_p9), [#allocation5], 4294967280 }
  0x4c   : > { %415 = sfence }
  0x4d   : > { %v478_v0 = vld [vmem:[%s406_s16] sm:$0x3]  ;;  %vm485_vm0 = vcmask 1041408   ;;  %vm481_vm1 = vcmask 15360   ;;  %v1821_v1 = vmov 0.0   ;;  %vm1822_vm2 = vmmov 0  }
  0x4e   : > { %1559 = vmatprep.subr.mxu0 %v1821_v1  ;;  %1561 = vmatprep.mubr.msk.f32.mxu0 %vm1822_vm2, %v1821_v1  ;;  %v480_v2 = vld [vmem:[%s2223_s2] sm:$0xf]  ;;  %v560_v4 = vld [vmem:[%s2224_s3 + $0x8] sm:$0xff]  ;;  %v1823_v5 = vmov 0.0|0.0   ;;  %v561_v7 = vld [vmem:[%s2224_s3 + $0x10] sm:$0xff]  ;;  %vm565_vm3 = vcmask 392192   ;;  %v460_v38 = vlaneseq }
  0x4f   : > { %v559_v3 = vld [vmem:[%s2224_s3] sm:$0xff]  ;;  %1560 = vmatpush3.msk.msra.mxu0 %vm485_vm0, %v478_v0  ;;  %1624 = vmatprep.subr.bf16.mxu1 %v1823_v5  ;;  %v562_v8 = vld [vmem:[%s2224_s3 + $0x18] sm:$0xff]  ;;  %v564_v11 = vld [vmem:[%s2224_s3 + $0x28] sm:$0xff]  ;;  %p456_p8 = scmp.lt.s32.totalorder %s1914_s25, 1  ;;  %vm723_vm4 = vcmask 1045504   ;;  %vm719_vm5 = vcmask 48128  }
  0x50   : > { %v1625_v6 = vpack.c.bf16 %v560_v4, %v559_v3  ;;  %1562 = vmatmul.mubr.msk.f32.vlgmr.msra.gmra.mrb[0].mxu0 %vm481_vm1, %v480_v2  ;;  %1576 = vmatprep.mubr.msk.f32.mxu1 %vm1822_vm2, %v1821_v1  ;;  %v1628_v9 = vpack.c.bf16 %v562_v8, %v561_v7  ;;  %v563_v10 = vld [vmem:[%s2224_s3 + $0x20] sm:$0xff]  ;;  %v1508_v16 = vld [vmem:[%s2225_s4 + $0x8] sm:$0x3f]  ;;  %v1824_v19 = vmov 0   ;;  %vm645_vm6 = vcmask 1043456   ;;  %s1825_s16 = smov 1  }
  0x51   : > { %1579 = vmatprep.subr.mxu0 %v1821_v1  ;;  %1581 = vmatprep.mubr.msk.f32.mxu0 %vm1822_vm2, %v1821_v1  ;;  %v1631_v12 = vpack.c.bf16 %v564_v11, %v563_v10  ;;  %s457_s29 = scalar_select %p456_p8, %s1914_s25, 1  ;;  %v1109_v17 = vld [vmem:[%s2227_s6] sm:$0x3f]  ;;  %vm641_vm7 = vcmask 31744   ;;  %v1509_v24 = vld [vmem:[%s2226_s5 + $0x8] sm:$0x3f] }
  0x52   : > { %1626 = vmatpush3.bf16.msra.mxu1 %v1625_v6  ;;  %v1116_v18 = vld [vmem:[%s2228_s7] sm:$0x3f]  ;;  %1700 = vset.pattern.permute.xlu0 %v1824_v19  ;;  %v1515_v25 = vld [vmem:[%s2226_s5 + $0x10] sm:$0x3f]  ;;  %s1826_s19 = smov 127   ;;  %v461_v39 = vand.u32 127, %v460_v38 }
  0x53   : > { %1627 = vmatprep.subr.bf16.mxu1 %v1823_v5  ;;  %s1499_s13 = sshll.u32 %s457_s29, 3  ;;  %1701 = vset.pattern.permute.xlu1 %v1824_v19  ;;  %v640_v20 = vld [vmem:[%s2226_s5] sm:$0x3f]  ;;  %v1514_v26 = vld [vmem:[%s2225_s4 + $0x10] sm:$0x3f]  ;;  %s476_s26 = sld [smem:[#allocation6]] }
  0x54   : > { %s459_s11 = scalar_lea.vmem %s2222_s1, %s1499_s13  ;;  %1112 = vperm.xlu0 %1700, %v1109_v17   ;;  %1119 = vperm.xlu1 %1701, %v1116_v18   ;;  %v639_v23 = vld [vmem:[%s2225_s4] sm:$0x3f]  ;;  %v466_v41 = vand.u32 15, %v461_v39  ;;  %v1525_v57 = vld [vmem:[%s2229_s8 + $0x8] sm:$0xf]  ;;  %s1500_s27 = sld [smem:[#allocation6 + $0x1]] }
  0x55   : > { %v479_v15 = vld [vmem:[%s459_s11] sm:$0x3f]  ;;  %s1498_s29 = sshll.u32 %s2025_s23, 2  ;;  %s1382_s20 = scalar_lea.sflag [#allocation4], %s2025_s23 }
  0x56   : > { %1629 = vmatpush3.bf16.msra.mxu1 %v1628_v9  ;;  %v1362_v31 = vld [vmem:[%s2230_s9] sm:$0xf]  ;;  %vm2136_vm8 = vcmp.ne.s32.totalorder %v466_v41, 0  ;;  %vm2142_vm9 = vcmp.ne.s32.totalorder %v466_v41, 15  ;;  %v1522_v58 = vld [vmem:[%s2229_s8 + $0x4] sm:$0xf] }
  0x57   : > { %1630 = vmatprep.subr.bf16.mxu1 %v1823_v5  ;;  %v1369_v35 = vld [vmem:[%s2231_s10] sm:$0xf]  ;;  %s455_s13 = scalar_lea.vmem [#allocation7], %s1498_s29  ;;  %p2260_p13 = scmp.ne.s32.totalorder %s2251_s30, 0 }
  0x58   : > { %v1127_v55 = vld [vmem:[%s2229_s8] sm:$0xf] }
  0x59   : > { %v1124_v52 = vstv %s476_s26 }
  0x5a   : > { %1632 = vmatpush3.bf16.msra.mxu1 %v1631_v12  ;;  %v1377_v10 = vstv %s1500_s27 }
  0x5b   : > { %1594 = vmatprep.subr.mxu1 %v1821_v1 }
  0xd3   : > { %v1113_v40 = vpop.permute.xlu0 %1112  ;;  %v1120_v44 = vpop.permute.xlu1 %1119 }
 0x123   : > { %v555_v13 = vpop.f32.mrb[0].mxu0 }
 0x124   : > { %v1563_v14 = vpop.f32.mrb[1].mxu0  ;;  %1577 = vmatmul.mubr.msk.f32.vlgmr.msra.gmra.mrb[0].mxu1 %vm565_vm3, %v555_v13 }
 0x125   : > { %1596 = vmatprep.mubr.msk.f32.mxu1 %vm1822_vm2, %v1821_v1  ;;  %1595 = vmatpush3.msk.msra.mxu1 %vm723_vm4, %v479_v15 }
 0x126   : > { %1609 = vmatprep.subr.mxu1 %v1821_v1 }
 0x128   : > { %1597 = vmatmul.mubr.msk.f32.vlgmr.msra.gmra.mrb[2].mxu1 %vm719_vm5, %v1508_v16 }
 0x129   : > { %1611 = vmatprep.mubr.msk.f32.mxu1 %vm1822_vm2, %v1821_v1 }
 0x1f7   : > { %v635_v21 = vpop.f32.mrb[0].mxu1 }
 0x1f8   : > { %v1578_v22 = vpop.f32.mrb[1].mxu1  ;;  %1580 = vmatpush3.msk.msra.mxu0 %vm645_vm6, %v635_v21 }
 0x1f9   : > { %1582 = vmatmul.mubr.msk.f32.vlgmr.msra.gmra.mrb[2].mxu0 %vm641_vm7, %v640_v20  ;;  %1584 = vmatprep.subr.mxu0 %v1821_v1 }
 0x1fa   : > { %1585 = vmatpush3.msk.msra.mxu0 %vm723_vm4, %v479_v15  ;;  %1586 = vmatprep.mubr.msk.f32.mxu0 %vm1822_vm2, %v1821_v1 }
 0x1fb   : > { %1589 = vmatprep.subr.mxu0 %v1821_v1  ;;  %v943_v27 = vpop.f32.mrb[2].mxu1 }
 0x1fc   : > { %v1598_v28 = vpop.f32.mrb[3].mxu1 }
 0x201   : > { %1587 = vmatmul.mubr.msk.f32.vlgmr.msra.gmra.mrb[2].mxu0 %vm719_vm5, %v639_v23 }
 0x202   : > { %1590 = vmatpush3.msk.msra.mxu0 %vm645_vm6, %v635_v21  ;;  %1591 = vmatprep.mubr.msk.f32.mxu0 %vm1822_vm2, %v1821_v1 }
 0x203   : > { %1599 = vmatprep.subr.mxu0 %v1821_v1 }
 0x205   : > { %1592 = vmatmul.mubr.msk.f32.vlgmr.msra.gmra.mrb[4].mxu0 %vm641_vm7, %v1509_v24 }
 0x206   : > { %1600 = vmatpush3.msk.msra.mxu0 %vm645_vm6, %v635_v21  ;;  %1601 = vmatprep.mubr.msk.f32.mxu0 %vm1822_vm2, %v1821_v1 }
 0x207   : > { %1604 = vmatprep.subr.mxu0 %v1821_v1 }
 0x209   : > { %1602 = vmatmul.mubr.msk.f32.vlgmr.msra.gmra.mrb[6].mxu0 %vm641_vm7, %v1515_v25 }
 0x20a   : > { %1605 = vmatpush3.msk.msra.mxu0 %vm723_vm4, %v479_v15  ;;  %1606 = vmatprep.mubr.msk.f32.mxu0 %vm1822_vm2, %v1821_v1 }
 0x20b   : > { %1619 = vmatprep.subr.mxu0 %v1821_v1 }
 0x211   : > { %1607 = vmatmul.mubr.msk.f32.vlgmr.msra.gmra.mrb[6].mxu0 %vm719_vm5, %v1514_v26 }
 0x212   : > { %1621 = vmatprep.mubr.msk.f32.mxu0 %vm1822_vm2, %v1821_v1 }
 0x2d4   : > { %v793_v29 = vpop.f32.mrb[2].mxu0 }
 0x2d5   : > { %1097 = vrot.lane.b32.xlu0 %v793_v29, %s1825_s16  ;;  %v1588_v30 = vpop.f32.mrb[3].mxu0 }
 0x2d8   : > { %v870_v32 = vpop.f32.mrb[4].mxu0 }
 0x2d9   : > { %v944_v33 = vadd.f32 %v943_v27, %v870_v32  ;;  %1365 = vperm.xlu0 %1700, %v1362_v31   ;;  %v1593_v34 = vpop.f32.mrb[5].mxu0 }
 0x2dd   : > { %1372 = vperm.xlu0 %1700, %v1369_v35  }
 0x2e4   : > { %v1093_v36 = vpop.f32.mrb[6].mxu0 }
 0x2e5   : > { %1102 = vrot.lane.b32.xlu1 %v1093_v36, %s1826_s19  ;;  %v1608_v37 = vpop.f32.mrb[7].mxu0 }
 0x347   : > { %v1098_v43 = vpop.permute.xlu0 %1097 }
 0x348   : > { %v1101_v45 = vsel %vm2136_vm8, %v1098_v43, 0.0 }
 0x349   : > { %v1107_v47 = vadd.f32 %v1101_v45, %v944_v33 }
 0x357   : > { %v1103_v48 = vpop.permute.xlu1 %1102 }
 0x358   : > { %v1106_v49 = vsel %vm2142_vm9, %v1103_v48, 0.0 }
 0x359   : > { %v1108_v50 = vadd.f32 %v1107_v47, %v1106_v49 }
 0x35b   : > { %v1115_v51 = vmul.f32 %v1113_v40, %v1108_v50 }
 0x35d   : > { %v1122_v53 = vadd.f32 %v1120_v44, %v1115_v51 }
 0x35f   : > { %v1125_v54 = vmul.f32 %v1124_v52, %v1122_v53  ;;  %vm1123_vm10 = vcmp.ge.f32.partialorder %v1122_v53, 0.0 }
 0x361   : > { %v1126_v56 = vsel %vm1123_vm10, %v1122_v53, %v1125_v54 }
 0x362   : > { %1610 = vmatpush3.msk.msra.mxu1 %vm723_vm4, %v1126_v56  ;;  %1620 = vmatpush3.msk.msra.mxu0 %vm723_vm4, %v1126_v56 }
 0x363   : > { %1612 = vmatmul.mubr.msk.f32.vlgmr.msra.gmra.mrb[4].mxu1 %vm719_vm5, %v1127_v55  ;;  %1614 = vmatprep.subr.mxu1 %v1821_v1 }
 0x364   : > { %1615 = vmatpush3.msk.msra.mxu1 %vm723_vm4, %v1126_v56  ;;  %1622 = vmatmul.mubr.msk.f32.vlgmr.msra.gmra.mrb[8].mxu0 %vm719_vm5, %v1525_v57 }
 0x365   : > { %1616 = vmatprep.mubr.msk.f32.mxu1 %vm1822_vm2, %v1821_v1  ;;  %v1366_v1 = vpop.permute.xlu0 %1365 }
 0x367   : > { %1617 = vmatmul.mubr.msk.f32.vlgmr.msra.gmra.mrb[6].mxu1 %vm719_vm5, %v1522_v58 }
 0x369   : > { %v1373_v9 = vpop.permute.xlu0 %1372 }
 0x436   : > { %v1200_v59 = vpop.f32.mrb[4].mxu1 }
 0x437   : > { %1354 = vrot.lane.b32.xlu1 %v1200_v59, %s1825_s16  ;;  %v1613_v60 = vpop.f32.mrb[5].mxu1  ;;  %v1350_v61 = vpop.f32.mrb[8].mxu0  ;;  %s1529_s16 = sshll.u32 %s1914_s25, 6  ;;  %s1827_s25 = smov [#allocation7]  }
 0x438   : > { %v1623_v62 = vpop.f32.mrb[9].mxu0  ;;  %s2177_s15 = scalar_lea.hbm %s2233_s12, %s1529_s16  ;;  %s1751_s18 = sshll.u32 %s1827_s25, 4  ;;  %s1752_s18 = int_to_ptr.vmem [resolvable:$false] %s1751_s18 }
 0x439   : > { %s1753_s14 = scalar_lea.vmem %s1752_s18, 128 }
 0x43a   : > { %v1275_v63 = vpop.f32.mrb[6].mxu1 }
 0x43b   : > { %1357 = vrot.lane.b32.xlu1 %v1350_v61, %s1826_s19  ;;  %v1618_v0 = vpop.f32.mrb[7].mxu1  ;;  %s1395_s19 = sshll.u32 %s455_s13, 4  ;;  %s2179_s19 = int_to_ptr.vmem [resolvable:$true] %s1395_s19 }
 0x43c   : > { %s1747_s17 = scalar_lea.vmem %s2179_s19, 64  ;;  %p1754_p3 = scmp.lt.s32.totalorder %s2179_s19, %s1752_s18 }
 0x43d   : > { %p1748_p11 = scmp.ne.s32.totalorder %s2179_s19, %s1747_s17  ;;  %p1755_p12 = scmp.lt.s32.totalorder %s1753_s14, %s1747_s17 }
 0x43f   : > { %p1749_p7 = pnand %p1748_p11, %p2260_p13  ;;  %p1756_p5 = por %p1755_p12, %p1754_p3 }
 0x441   : > { %p1750_p0 = pneg %p1749_p7 }
 0x443   : > { %p1757_p10 = pnand %p1756_p5, %p1750_p0 }
 0x4a9   : > { %v1355_v2 = vpop.permute.xlu1 %1354 }
 0x4aa   : > { %v1356_v3 = vsel %vm2136_vm8, %v1355_v2, 0.0 }
 0x4ab   : > { %v1360_v4 = vadd.f32 %v1356_v3, %v1275_v63 }
 0x4ad   : > { %v1358_v5 = vpop.permute.xlu1 %1357 }
 0x4ae   : > { %v1359_v6 = vsel %vm2142_vm9, %v1358_v5, 0.0 }
 0x4af   : > { %v1361_v7 = vadd.f32 %v1360_v4, %v1359_v6 }
 0x4b1   : > { %v1368_v8 = vmul.f32 %v1366_v1, %v1361_v7 }
 0x4b3   : > { %v1375_v11 = vadd.f32 %v1373_v9, %v1368_v8 }
 0x4b5   : > { %vm1376_vm11 = vcmp.ge.f32.partialorder %v1375_v11, 0.0  ;;  %v1378_v12 = vmul.f32 %v1377_v10, %v1375_v11 }
 0x4b7   : > { %v1379_v13 = vsel %vm1376_vm11, %v1375_v11, %v1378_v12 }
 0x4b8   : > { %1380 = vst [vmem:[%s455_s13] sm:$0xf] %v1379_v13 }
 0x4b9   : > { %1760 = shalt.err (!%p1757_p10)
}
 0x4ba   : > { %s1761_s23 = scalar_lea.hbm %s2177_s15, 64  ;;  %s1765_s16 = scalar_lea.hbm %s2233_s12, 128 }
 0x4bb   : > { %p1762_p2 = scmp.ne.s32.totalorder %s2177_s15, %s1761_s23  ;;  %p1766_p6 = scmp.lt.u32.totalorder %s2177_s15, %s2233_s12 }
 0x4bc   : > { %p1767_p9 = scmp.lt.u32.totalorder %s1765_s16, %s1761_s23  ;;  %p1769_p11 = scmp.lt.u32.totalorder %s1761_s23, %s2177_s15 }
 0x4bd   : > { %p1763_p1 = pnand %p1762_p2, %p2260_p13 }
 0x4be   : > { %p1768_p8 = por %p1767_p9, %p1766_p6 }
 0x4bf   : > { %p1764_p4 = pneg %p1763_p1 }
 0x4c0   : > { %p1770_p7 = por %p1769_p11, %p1768_p8 }
 0x4c2   : > { %p1771_p0 = pnand %p1770_p7, %p1764_p4 }
 0x4c4   : > { %1774 = shalt.err (!%p1771_p0)
}
 0x4c5   : > { %1643 = dma.vmem_to_hbm [thread:$0]  (%p2260_p13), %s2179_s19, 64, %s2177_s15, %s1382_s20  }
 0x4c6 PF: > { %s1407_s11 = sand.u32 1, %s1805_s21   ;;  %p2261_p3 = scmp.ne.s32.totalorder %s2243_s28, 0 }
 0x4c7   : > { %p2262_p12 = scmp.ge.s32.totalorder %s1817_s24, 2  ;;  %s1408_s17 = scalar_lea.sflag [#allocation4], %s1407_s11 }
 0x4c9   : > { %p1654_p5 = pnand %p2262_p12, %p2261_p3 }
 0x4cb   : > { %1800 = dma.done.wait (!%p1654_p5), %s1408_s17, 64  }
 0x4cc   : > { %1802 = vsyncadd (!%p1654_p5), %s1408_s17, 4294967232  ;;  %s2263_s24 = sld [smem:[#allocation12_spill]]  ;;  %s2264_s25 = sld [smem:[#allocation11_spill]] }
 0x4cd   : > { %s2265_s23 = sld [smem:[#allocation13_spill]]  ;;  %s2266_s21 = smov %s1809_s22 }
 0x4d2   : > { %p26_p10 = scmp.ge.s32.totalorder %s2263_s24, 4   ;;  %s2267_s22 = smov %s2264_s25 }
 0x4d4   :  { %28 = sbr.rel (!%p26_p10) target bundleno = 8 (0x8), region = 127 }
 0x4db   :  { %1413 = vsyncpa [#allocation3], 1 }
 0x4dc   :  { %1415 = vsyncpa [#allocation3 + $0x1], 1 }
 0x4dd   :  { %1416 = vsyncpa [#allocation4], 1 }
 0x4de   :  { %1418 = vsyncpa [#allocation4 + $0x1], 1 }
 0x4df   :  { %1419 = vsyncpa [#allocation5], 1 }
 0x4e0   :  { %1421 = vsyncpa [#allocation5 + $0x1], 1 }

</bundles_post_ra>
